<compile_context>
chip_gen: v6e
topology: v6e:2x2x1
jax: 0.10.0
libtpu: 0.0.40
codegen_flags: <defaults>
</compile_context>

<pallas_src>
import functools

import jax
import jax.numpy as jnp
from jax import lax
from jax.experimental import pallas as pl
from jax.experimental.pallas import tpu as pltpu


def _mhsa_kernel(z_ref, mask_ref, wqkv_ref, wout_ref,
                 out_ref, attn_mean_ref, ctx_ref, *, num_heads, d_k, scale):
    # z_ref:         (1, T, D)    input block for this batch element
    # mask_ref:      (1, T, T)    additive mask, shared across heads
    # wqkv_ref:      (D, 3*D)     full QKV projection (VMEM-resident)
    # wout_ref:      (D, D)       full output projection (VMEM-resident)
    # out_ref:       (1, T, D)    attention-block output
    # attn_mean_ref: (1, T, T)    attention probabilities averaged over heads
    # ctx_ref:       (T, D) f32   scratch staging concat_heads(ctx) for Wout
    D = num_heads * d_k

    # Fused QKV projection for all heads: bf16 operands, f32 accumulation.
    z = z_ref[0].astype(jnp.bfloat16)                               # (T, D)
    wqkv = wqkv_ref[...].astype(jnp.bfloat16)                       # (D, 3D)
    qkv = jnp.dot(z, wqkv, preferred_element_type=jnp.float32)      # (T, 3D)

    mask = mask_ref[0]                                              # (T, T) f32
    attn_sum = jnp.zeros_like(mask)

    # Static (unrolled) head loop: all slices below have static offsets.
    for h in range(num_heads):
        q = qkv[:, h * d_k:(h + 1) * d_k] * scale        # fold 1/sqrt(dk) into q
        k = qkv[:, D + h * d_k:D + (h + 1) * d_k]
        v = qkv[:, 2 * D + h * d_k:2 * D + (h + 1) * d_k]

        # scores[i, j] = sum_d q[i, d] * k[j, d]   (contract dk on the MXU)
        scores = lax.dot_general(
            q.astype(jnp.bfloat16), k.astype(jnp.bfloat16),
            (((1,), (1,)), ((), ())),
            preferred_element_type=jnp.float32)                     # (T, T)
        scores = scores + mask

        # numerically-stable softmax along the key axis
        m = jnp.max(scores, axis=-1, keepdims=True)
        e = jnp.exp(scores - m)
        s = jnp.sum(e, axis=-1, keepdims=True)
        attn = e * pl.reciprocal(s, approx=True)                    # (T, T)
        attn_sum = attn_sum + attn
        # TODO(synk): train-mode dropout on `attn` (via pltpu.prng_*) would be
        # applied here, AFTER accumulating into attn_sum; eval / p=0 forward.

        ctx = jnp.dot(attn.astype(jnp.bfloat16), v.astype(jnp.bfloat16),
                      preferred_element_type=jnp.float32)           # (T, dk)
        ctx_ref[:, h * d_k:(h + 1) * d_k] = ctx          # static lane-slice store

    # Deferred output projection: one (T, D) @ (D, D) matmul with a K=D
    # contraction instead of H rank-dk read-modify-write passes.
    out_ref[0] = jnp.dot(ctx_ref[...].astype(jnp.bfloat16),
                         wout_ref[...].astype(jnp.bfloat16),
                         preferred_element_type=jnp.float32)
    attn_mean_ref[0] = attn_sum * (1.0 / num_heads)      # single scale at the end


def mhsa_block(z, mask, wqkv, wout, num_heads, *,
               vmem_limit_bytes=64 * 1024 * 1024):
    """Pallas equivalent of MultiHeadSelfAttentionBlock.forward (eval mode).

    z:    (N, T, D) float32
    mask: (N, T, T) float32 additive mask (broadcast over heads)
    wqkv: (D, 3*D) float32,  wout: (D, D) float32
    Returns (out, attn_mean) with shapes ((N, T, D), (N, T, T)).
    """
    N, T, D = z.shape
    H = num_heads
    assert D % H == 0, "D is not divisible by H"
    d_k = D // H
    scale = float(d_k) ** (-0.5)

    kernel = functools.partial(_mhsa_kernel, num_heads=H, d_k=d_k, scale=scale)
    out, attn_mean = pl.pallas_call(
        kernel,
        out_shape=(jax.ShapeDtypeStruct((N, T, D), jnp.float32),
                   jax.ShapeDtypeStruct((N, T, T), jnp.float32)),
        grid_spec=pltpu.PrefetchScalarGridSpec(
            num_scalar_prefetch=0,
            grid=(N,),
            in_specs=[
                pl.BlockSpec((1, T, D), lambda b: (b, 0, 0)),   # z
                pl.BlockSpec((1, T, T), lambda b: (b, 0, 0)),   # mask
                pl.BlockSpec((D, 3 * D), lambda b: (0, 0)),     # Wqkv (resident, DMA'd once)
                pl.BlockSpec((D, D), lambda b: (0, 0)),         # Wout (resident, DMA'd once)
            ],
            out_specs=[
                pl.BlockSpec((1, T, D), lambda b: (b, 0, 0)),   # out
                pl.BlockSpec((1, T, T), lambda b: (b, 0, 0)),   # attn mean
            ],
            scratch_shapes=[pltpu.VMEM((T, D), jnp.float32)],   # concat-ctx staging
        ),
        compiler_params=pltpu.CompilerParams(
            dimension_semantics=("parallel",),
            vmem_limit_bytes=vmem_limit_bytes),
    )(z, mask, wqkv, wout)
    return out, attn_mean


def _ref_mhsa(z, mask, wqkv, wout, H):
    """Pure-JAX reference mirroring the PyTorch forward (f32)."""
    N, T, D = z.shape
    d_k = D // H
    qkv = z @ wqkv
    q, k, v = jnp.split(qkv, 3, axis=-1)
    q = q.reshape(N, T, H, d_k).transpose(0, 2, 1, 3)
    k = k.reshape(N, T, H, d_k).transpose(0, 2, 1, 3)
    v = v.reshape(N, T, H, d_k).transpose(0, 2, 1, 3)
    scores = jnp.einsum('nhtd,nhsd->nhts', q, k) * (d_k ** -0.5) + mask[:, None, :, :]
    attn = jax.nn.softmax(scores, axis=-1)
    ctx = jnp.einsum('nhts,nhsd->nhtd', attn, v)
    ctx = ctx.transpose(0, 2, 1, 3).reshape(N, T, D)
    return ctx @ wout, attn.mean(axis=1)


if __name__ == "__main__":
    N, T, D, H = 2, 8, 32, 4

    key = jax.random.PRNGKey(0)
    kz, kw1, kw2 = jax.random.split(key, 3)
    z = jax.random.normal(kz, (N, T, D), dtype=jnp.float32)
    # Moderate weight scale keeps the bf16-MXU test numerically well-conditioned.
    wqkv = jax.random.normal(kw1, (D, 3 * D), dtype=jnp.float32) * 0.125
    wout = jax.random.normal(kw2, (D, D), dtype=jnp.float32) * 0.125
    # Encoder-style padding mask: mask out the last 2 key positions of batch 1.
    mask = jnp.zeros((N, T, T), dtype=jnp.float32)
    mask = mask.at[1, :, T - 2:].set(-1e9)

    out, attn_mean = jax.block_until_ready(mhsa_block(z, mask, wqkv, wout, H))

    ref_out, ref_attn = _ref_mhsa(z, mask, wqkv, wout, H)
    assert out.shape == (N, T, D) and attn_mean.shape == (N, T, T)
    assert out.dtype == jnp.float32 and attn_mean.dtype == jnp.float32
    # bf16 MXU operands -> tolerances re-validated for the mixed-precision path.
    assert jnp.allclose(out, ref_out, rtol=2e-2, atol=2e-2), \
        float(jnp.max(jnp.abs(out - ref_out)))
    assert jnp.allclose(attn_mean, ref_attn, rtol=2e-2, atol=1e-2), \
        float(jnp.max(jnp.abs(attn_mean - ref_attn)))
    print("KERNEL_OK")
</pallas_src>

<mosaic_0001>
module attributes {stable_mosaic.version = 11 : i64} {
  func.func @_mhsa_kernel(%arg0: i32, %arg1: memref<1x8x32xf32, #tpu.memory_space<vmem>>, %arg2: memref<1x8x8xf32, #tpu.memory_space<vmem>>, %arg3: memref<32x96xf32, #tpu.memory_space<vmem>>, %arg4: memref<32x32xf32, #tpu.memory_space<vmem>>, %arg5: memref<1x8x32xf32, #tpu.memory_space<vmem>>, %arg6: memref<1x8x8xf32, #tpu.memory_space<vmem>>, %arg7: memref<8x32xf32, #tpu.memory_space<vmem>>) attributes {dimension_semantics = [#tpu.dimension_semantics<parallel>], iteration_bounds = array<i64: 2>, scalar_prefetch = 0 : i64, scratch_operands = 1 : i64, tpu.core_type = #tpu.core_type<tc>, window_params = [{transform_indices = @transform_0, window_bounds = array<i64: 1, 8, 32>}, {transform_indices = @transform_1, window_bounds = array<i64: 1, 8, 8>}, {pipeline_mode = #tpu.pipeline_mode<synchronous>, transform_indices = @transform_2, window_bounds = array<i64: 32, 96>}, {pipeline_mode = #tpu.pipeline_mode<synchronous>, transform_indices = @transform_3, window_bounds = array<i64: 32, 32>}, {transform_indices = @transform_4, window_bounds = array<i64: 1, 8, 32>}, {transform_indices = @transform_5, window_bounds = array<i64: 1, 8, 8>}]} {
    %c0 = arith.constant 0 : index
    %c0_0 = arith.constant 0 : index
    %c0_1 = arith.constant 0 : index
    %0 = vector.load %arg1[%c0, %c0_0, %c0_1] : memref<1x8x32xf32, #tpu.memory_space<vmem>>, vector<1x8x32xf32>
    %1 = vector.shape_cast %0 : vector<1x8x32xf32> to vector<8x32xf32>
    %2 = arith.truncf %1 : vector<8x32xf32> to vector<8x32xbf16>
    %c0_2 = arith.constant 0 : index
    %c0_3 = arith.constant 0 : index
    %3 = vector.load %arg3[%c0_2, %c0_3] : memref<32x96xf32, #tpu.memory_space<vmem>>, vector<32x96xf32>
    %4 = arith.truncf %3 : vector<32x96xf32> to vector<32x96xbf16>
    %cst = arith.constant dense<0.000000e+00> : vector<8x96xf32>
    %5 = tpu.matmul %2, %4, %cst {dimension_numbers = #tpu.dot_dimension_numbers<[1], [0], [0], [1], [0, 0, 1, 1], [], []>} : vector<8x32xbf16>, vector<32x96xbf16>, vector<8x96xf32> -> vector<8x96xf32>
    %c0_4 = arith.constant 0 : index
    %c0_5 = arith.constant 0 : index
    %c0_6 = arith.constant 0 : index
    %6 = vector.load %arg2[%c0_4, %c0_5, %c0_6] : memref<1x8x8xf32, #tpu.memory_space<vmem>>, vector<1x8x8xf32>
    %7 = vector.shape_cast %6 : vector<1x8x8xf32> to vector<8x8xf32>
    %cst_7 = arith.constant 0.000000e+00 : f32
    %8 = vector.broadcast %cst_7 : f32 to vector<8x8xf32>
    %9 = vector.extract_strided_slice %5 {offsets = [0, 0], sizes = [8, 8], strides = [1, 1]} : vector<8x96xf32> to vector<8x8xf32>
    %cst_8 = arith.constant 0.353553385 : f32
    %10 = vector.broadcast %cst_8 : f32 to vector<8x8xf32>
    %11 = arith.mulf %9, %10 : vector<8x8xf32>
    %12 = vector.extract_strided_slice %5 {offsets = [0, 32], sizes = [8, 8], strides = [1, 1]} : vector<8x96xf32> to vector<8x8xf32>
    %13 = vector.extract_strided_slice %5 {offsets = [0, 64], sizes = [8, 8], strides = [1, 1]} : vector<8x96xf32> to vector<8x8xf32>
    %14 = arith.truncf %11 : vector<8x8xf32> to vector<8x8xbf16>
    %15 = arith.truncf %12 : vector<8x8xf32> to vector<8x8xbf16>
    %cst_9 = arith.constant dense<0.000000e+00> : vector<8x8xf32>
    %16 = tpu.matmul %14, %15, %cst_9 {dimension_numbers = #tpu.dot_dimension_numbers<[1], [1], [0], [0], [0, 0, 1, 0], [], []>} : vector<8x8xbf16>, vector<8x8xbf16>, vector<8x8xf32> -> vector<8x8xf32>
    %17 = arith.addf %16, %7 : vector<8x8xf32>
    %cst_10 = arith.constant dense<0xFF800000> : vector<8xf32>
    %18 = vector.multi_reduction <maximumf>, %17, %cst_10 [1] : vector<8x8xf32> to vector<8xf32>
    %19 = vector.shape_cast %18 : vector<8xf32> to vector<8x1xf32>
    %20 = vector.broadcast %19 : vector<8x1xf32> to vector<8x8xf32>
    %21 = arith.subf %17, %20 : vector<8x8xf32>
    %22 = math.exp %21 : vector<8x8xf32>
    %cst_11 = arith.constant dense<0.000000e+00> : vector<8xf32>
    %23 = vector.multi_reduction <add>, %22, %cst_11 [1] : vector<8x8xf32> to vector<8xf32>
    %24 = vector.shape_cast %23 : vector<8xf32> to vector<8x1xf32>
    %25 = tpu.reciprocal %24 {approx = true} : vector<8x1xf32> -> vector<8x1xf32>
    %26 = vector.broadcast %25 : vector<8x1xf32> to vector<8x8xf32>
    %27 = arith.mulf %22, %26 : vector<8x8xf32>
    %28 = arith.addf %8, %27 : vector<8x8xf32>
    %29 = arith.truncf %27 : vector<8x8xf32> to vector<8x8xbf16>
    %30 = arith.truncf %13 : vector<8x8xf32> to vector<8x8xbf16>
    %cst_12 = arith.constant dense<0.000000e+00> : vector<8x8xf32>
    %31 = tpu.matmul %29, %30, %cst_12 {dimension_numbers = #tpu.dot_dimension_numbers<[1], [0], [0], [1], [0, 0, 1, 1], [], []>} : vector<8x8xbf16>, vector<8x8xbf16>, vector<8x8xf32> -> vector<8x8xf32>
    %c0_13 = arith.constant 0 : index
    %c0_14 = arith.constant 0 : index
    %32 = vector.load %arg7[%c0_13, %c0_14] : memref<8x32xf32, #tpu.memory_space<vmem>>, vector<8x8xf32>
    tpu.vector_store %arg7[%c0_13, %c0_14], %31 {strides = array<i32>} : memref<8x32xf32, #tpu.memory_space<vmem>>, vector<8x8xf32>,
    %33 = vector.extract_strided_slice %5 {offsets = [0, 8], sizes = [8, 8], strides = [1, 1]} : vector<8x96xf32> to vector<8x8xf32>
    %cst_15 = arith.constant 0.353553385 : f32
    %34 = vector.broadcast %cst_15 : f32 to vector<8x8xf32>
    %35 = arith.mulf %33, %34 : vector<8x8xf32>
    %36 = vector.extract_strided_slice %5 {offsets = [0, 40], sizes = [8, 8], strides = [1, 1]} : vector<8x96xf32> to vector<8x8xf32>
    %37 = vector.extract_strided_slice %5 {offsets = [0, 72], sizes = [8, 8], strides = [1, 1]} : vector<8x96xf32> to vector<8x8xf32>
    %38 = arith.truncf %35 : vector<8x8xf32> to vector<8x8xbf16>
    %39 = arith.truncf %36 : vector<8x8xf32> to vector<8x8xbf16>
    %cst_16 = arith.constant dense<0.000000e+00> : vector<8x8xf32>
    %40 = tpu.matmul %38, %39, %cst_16 {dimension_numbers = #tpu.dot_dimension_numbers<[1], [1], [0], [0], [0, 0, 1, 0], [], []>} : vector<8x8xbf16>, vector<8x8xbf16>, vector<8x8xf32> -> vector<8x8xf32>
    %41 = arith.addf %40, %7 : vector<8x8xf32>
    %cst_17 = arith.constant dense<0xFF800000> : vector<8xf32>
    %42 = vector.multi_reduction <maximumf>, %41, %cst_17 [1] : vector<8x8xf32> to vector<8xf32>
    %43 = vector.shape_cast %42 : vector<8xf32> to vector<8x1xf32>
    %44 = vector.broadcast %43 : vector<8x1xf32> to vector<8x8xf32>
    %45 = arith.subf %41, %44 : vector<8x8xf32>
    %46 = math.exp %45 : vector<8x8xf32>
    %cst_18 = arith.constant dense<0.000000e+00> : vector<8xf32>
    %47 = vector.multi_reduction <add>, %46, %cst_18 [1] : vector<8x8xf32> to vector<8xf32>
    %48 = vector.shape_cast %47 : vector<8xf32> to vector<8x1xf32>
    %49 = tpu.reciprocal %48 {approx = true} : vector<8x1xf32> -> vector<8x1xf32>
    %50 = vector.broadcast %49 : vector<8x1xf32> to vector<8x8xf32>
    %51 = arith.mulf %46, %50 : vector<8x8xf32>
    %52 = arith.addf %28, %51 : vector<8x8xf32>
    %53 = arith.truncf %51 : vector<8x8xf32> to vector<8x8xbf16>
    %54 = arith.truncf %37 : vector<8x8xf32> to vector<8x8xbf16>
    %cst_19 = arith.constant dense<0.000000e+00> : vector<8x8xf32>
    %55 = tpu.matmul %53, %54, %cst_19 {dimension_numbers = #tpu.dot_dimension_numbers<[1], [0], [0], [1], [0, 0, 1, 1], [], []>} : vector<8x8xbf16>, vector<8x8xbf16>, vector<8x8xf32> -> vector<8x8xf32>
    %c0_20 = arith.constant 0 : index
    %c8 = arith.constant 8 : index
    %56 = vector.load %arg7[%c0_20, %c8] : memref<8x32xf32, #tpu.memory_space<vmem>>, vector<8x8xf32>
    tpu.vector_store %arg7[%c0_20, %c8], %55 {strides = array<i32>} : memref<8x32xf32, #tpu.memory_space<vmem>>, vector<8x8xf32>,
    %57 = vector.extract_strided_slice %5 {offsets = [0, 16], sizes = [8, 8], strides = [1, 1]} : vector<8x96xf32> to vector<8x8xf32>
    %cst_21 = arith.constant 0.353553385 : f32
    %58 = vector.broadcast %cst_21 : f32 to vector<8x8xf32>
    %59 = arith.mulf %57, %58 : vector<8x8xf32>
    %60 = vector.extract_strided_slice %5 {offsets = [0, 48], sizes = [8, 8], strides = [1, 1]} : vector<8x96xf32> to vector<8x8xf32>
    %61 = vector.extract_strided_slice %5 {offsets = [0, 80], sizes = [8, 8], strides = [1, 1]} : vector<8x96xf32> to vector<8x8xf32>
    %62 = arith.truncf %59 : vector<8x8xf32> to vector<8x8xbf16>
    %63 = arith.truncf %60 : vector<8x8xf32> to vector<8x8xbf16>
    %cst_22 = arith.constant dense<0.000000e+00> : vector<8x8xf32>
    %64 = tpu.matmul %62, %63, %cst_22 {dimension_numbers = #tpu.dot_dimension_numbers<[1], [1], [0], [0], [0, 0, 1, 0], [], []>} : vector<8x8xbf16>, vector<8x8xbf16>, vector<8x8xf32> -> vector<8x8xf32>
    %65 = arith.addf %64, %7 : vector<8x8xf32>
    %cst_23 = arith.constant dense<0xFF800000> : vector<8xf32>
    %66 = vector.multi_reduction <maximumf>, %65, %cst_23 [1] : vector<8x8xf32> to vector<8xf32>
    %67 = vector.shape_cast %66 : vector<8xf32> to vector<8x1xf32>
    %68 = vector.broadcast %67 : vector<8x1xf32> to vector<8x8xf32>
    %69 = arith.subf %65, %68 : vector<8x8xf32>
    %70 = math.exp %69 : vector<8x8xf32>
    %cst_24 = arith.constant dense<0.000000e+00> : vector<8xf32>
    %71 = vector.multi_reduction <add>, %70, %cst_24 [1] : vector<8x8xf32> to vector<8xf32>
    %72 = vector.shape_cast %71 : vector<8xf32> to vector<8x1xf32>
    %73 = tpu.reciprocal %72 {approx = true} : vector<8x1xf32> -> vector<8x1xf32>
    %74 = vector.broadcast %73 : vector<8x1xf32> to vector<8x8xf32>
    %75 = arith.mulf %70, %74 : vector<8x8xf32>
    %76 = arith.addf %52, %75 : vector<8x8xf32>
    %77 = arith.truncf %75 : vector<8x8xf32> to vector<8x8xbf16>
    %78 = arith.truncf %61 : vector<8x8xf32> to vector<8x8xbf16>
    %cst_25 = arith.constant dense<0.000000e+00> : vector<8x8xf32>
    %79 = tpu.matmul %77, %78, %cst_25 {dimension_numbers = #tpu.dot_dimension_numbers<[1], [0], [0], [1], [0, 0, 1, 1], [], []>} : vector<8x8xbf16>, vector<8x8xbf16>, vector<8x8xf32> -> vector<8x8xf32>
    %c0_26 = arith.constant 0 : index
    %c16 = arith.constant 16 : index
    %80 = vector.load %arg7[%c0_26, %c16] : memref<8x32xf32, #tpu.memory_space<vmem>>, vector<8x8xf32>
    tpu.vector_store %arg7[%c0_26, %c16], %79 {strides = array<i32>} : memref<8x32xf32, #tpu.memory_space<vmem>>, vector<8x8xf32>,
    %81 = vector.extract_strided_slice %5 {offsets = [0, 24], sizes = [8, 8], strides = [1, 1]} : vector<8x96xf32> to vector<8x8xf32>
    %cst_27 = arith.constant 0.353553385 : f32
    %82 = vector.broadcast %cst_27 : f32 to vector<8x8xf32>
    %83 = arith.mulf %81, %82 : vector<8x8xf32>
    %84 = vector.extract_strided_slice %5 {offsets = [0, 56], sizes = [8, 8], strides = [1, 1]} : vector<8x96xf32> to vector<8x8xf32>
    %85 = vector.extract_strided_slice %5 {offsets = [0, 88], sizes = [8, 8], strides = [1, 1]} : vector<8x96xf32> to vector<8x8xf32>
    %86 = arith.truncf %83 : vector<8x8xf32> to vector<8x8xbf16>
    %87 = arith.truncf %84 : vector<8x8xf32> to vector<8x8xbf16>
    %cst_28 = arith.constant dense<0.000000e+00> : vector<8x8xf32>
    %88 = tpu.matmul %86, %87, %cst_28 {dimension_numbers = #tpu.dot_dimension_numbers<[1], [1], [0], [0], [0, 0, 1, 0], [], []>} : vector<8x8xbf16>, vector<8x8xbf16>, vector<8x8xf32> -> vector<8x8xf32>
    %89 = arith.addf %88, %7 : vector<8x8xf32>
    %cst_29 = arith.constant dense<0xFF800000> : vector<8xf32>
    %90 = vector.multi_reduction <maximumf>, %89, %cst_29 [1] : vector<8x8xf32> to vector<8xf32>
    %91 = vector.shape_cast %90 : vector<8xf32> to vector<8x1xf32>
    %92 = vector.broadcast %91 : vector<8x1xf32> to vector<8x8xf32>
    %93 = arith.subf %89, %92 : vector<8x8xf32>
    %94 = math.exp %93 : vector<8x8xf32>
    %cst_30 = arith.constant dense<0.000000e+00> : vector<8xf32>
    %95 = vector.multi_reduction <add>, %94, %cst_30 [1] : vector<8x8xf32> to vector<8xf32>
    %96 = vector.shape_cast %95 : vector<8xf32> to vector<8x1xf32>
    %97 = tpu.reciprocal %96 {approx = true} : vector<8x1xf32> -> vector<8x1xf32>
    %98 = vector.broadcast %97 : vector<8x1xf32> to vector<8x8xf32>
    %99 = arith.mulf %94, %98 : vector<8x8xf32>
    %100 = arith.addf %76, %99 : vector<8x8xf32>
    %101 = arith.truncf %99 : vector<8x8xf32> to vector<8x8xbf16>
    %102 = arith.truncf %85 : vector<8x8xf32> to vector<8x8xbf16>
    %cst_31 = arith.constant dense<0.000000e+00> : vector<8x8xf32>
    %103 = tpu.matmul %101, %102, %cst_31 {dimension_numbers = #tpu.dot_dimension_numbers<[1], [0], [0], [1], [0, 0, 1, 1], [], []>} : vector<8x8xbf16>, vector<8x8xbf16>, vector<8x8xf32> -> vector<8x8xf32>
    %c0_32 = arith.constant 0 : index
    %c24 = arith.constant 24 : index
    %104 = vector.load %arg7[%c0_32, %c24] : memref<8x32xf32, #tpu.memory_space<vmem>>, vector<8x8xf32>
    tpu.vector_store %arg7[%c0_32, %c24], %103 {strides = array<i32>} : memref<8x32xf32, #tpu.memory_space<vmem>>, vector<8x8xf32>,
    %c0_33 = arith.constant 0 : index
    %c0_34 = arith.constant 0 : index
    %105 = vector.load %arg7[%c0_33, %c0_34] : memref<8x32xf32, #tpu.memory_space<vmem>>, vector<8x32xf32>
    %106 = arith.truncf %105 : vector<8x32xf32> to vector<8x32xbf16>
    %c0_35 = arith.constant 0 : index
    %c0_36 = arith.constant 0 : index
    %107 = vector.load %arg4[%c0_35, %c0_36] : memref<32x32xf32, #tpu.memory_space<vmem>>, vector<32x32xf32>
    %108 = arith.truncf %107 : vector<32x32xf32> to vector<32x32xbf16>
    %cst_37 = arith.constant dense<0.000000e+00> : vector<8x32xf32>
    %109 = tpu.matmul %106, %108, %cst_37 {dimension_numbers = #tpu.dot_dimension_numbers<[1], [0], [0], [1], [0, 0, 1, 1], [], []>} : vector<8x32xbf16>, vector<32x32xbf16>, vector<8x32xf32> -> vector<8x32xf32>
    %c0_38 = arith.constant 0 : index
    %c0_39 = arith.constant 0 : index
    %c0_40 = arith.constant 0 : index
    %110 = vector.load %arg5[%c0_38, %c0_39, %c0_40] : memref<1x8x32xf32, #tpu.memory_space<vmem>>, vector<1x8x32xf32>
    %111 = vector.shape_cast %110 : vector<1x8x32xf32> to vector<8x32xf32>
    %112 = vector.shape_cast %109 : vector<8x32xf32> to vector<1x8x32xf32>
    tpu.vector_store %arg5[%c0_38, %c0_39, %c0_40], %112 {strides = array<i32>} : memref<1x8x32xf32, #tpu.memory_space<vmem>>, vector<1x8x32xf32>,
    %cst_41 = arith.constant 2.500000e-01 : f32
    %113 = vector.broadcast %cst_41 : f32 to vector<8x8xf32>
    %114 = arith.mulf %100, %113 : vector<8x8xf32>
    %c0_42 = arith.constant 0 : index
    %c0_43 = arith.constant 0 : index
    %c0_44 = arith.constant 0 : index
    %115 = vector.load %arg6[%c0_42, %c0_43, %c0_44] : memref<1x8x8xf32, #tpu.memory_space<vmem>>, vector<1x8x8xf32>
    %116 = vector.shape_cast %115 : vector<1x8x8xf32> to vector<8x8xf32>
    %117 = vector.shape_cast %114 : vector<8x8xf32> to vector<1x8x8xf32>
    tpu.vector_store %arg6[%c0_42, %c0_43, %c0_44], %117 {strides = array<i32>} : memref<1x8x8xf32, #tpu.memory_space<vmem>>, vector<1x8x8xf32>,
    return
  }
  func.func @transform_0(%arg0: i32) -> (i32, i32, i32) {
    %c0_i32 = arith.constant 0 : i32
    %c0_i32_0 = arith.constant 0 : i32
    %c0_i32_1 = arith.constant 0 : i32
    return %arg0, %c0_i32, %c0_i32_0 : i32, i32, i32
  }
  func.func @transform_1(%arg0: i32) -> (i32, i32, i32) {
    %c0_i32 = arith.constant 0 : i32
    %c0_i32_0 = arith.constant 0 : i32
    %c0_i32_1 = arith.constant 0 : i32
    return %arg0, %c0_i32, %c0_i32_0 : i32, i32, i32
  }
  func.func @transform_2(%arg0: i32) -> (i32, i32) {
    %c0_i32 = arith.constant 0 : i32
    %c0_i32_0 = arith.constant 0 : i32
    %c0_i32_1 = arith.constant 0 : i32
    return %c0_i32, %c0_i32_0 : i32, i32
  }
  func.func @transform_3(%arg0: i32) -> (i32, i32) {
    %c0_i32 = arith.constant 0 : i32
    %c0_i32_0 = arith.constant 0 : i32
    %c0_i32_1 = arith.constant 0 : i32
    return %c0_i32, %c0_i32_0 : i32, i32
  }
  func.func @transform_4(%arg0: i32) -> (i32, i32, i32) {
    %c0_i32 = arith.constant 0 : i32
    %c0_i32_0 = arith.constant 0 : i32
    %c0_i32_1 = arith.constant 0 : i32
    return %arg0, %c0_i32, %c0_i32_0 : i32, i32, i32
  }
  func.func @transform_5(%arg0: i32) -> (i32, i32, i32) {
    %c0_i32 = arith.constant 0 : i32
    %c0_i32_0 = arith.constant 0 : i32
    %c0_i32_1 = arith.constant 0 : i32
    return %arg0, %c0_i32, %c0_i32_0 : i32, i32, i32
  }
}

</mosaic_0001>

<bundles_post_ra>
// kernel: tpu_custom_call.1
= control target key start
LH: loop header
LB: loop body
LE: loop exit
PB: predicated region body
PF: predicated region fallthrough
CT: control target
= control target key end

     0   :  { %s1899_s0 = inlined_call_operand.hbm [shape: f32[2,8,32], index: 0, kind: input, shape index: {}]   ;;  %s1900_s1 = inlined_call_operand.hbm [shape: f32[2,8,8], index: 1, kind: input, shape index: {}]   ;;  %s1901_s2 = inlined_call_operand.hbm [shape: f32[32,96], index: 2, kind: input, shape index: {}]   ;;  %s1902_s3 = inlined_call_operand.hbm [shape: f32[32,32], index: 3, kind: input, shape index: {}]   ;;  %s1903_s4 = inlined_call_operand.hbm [shape: f32[2,8,32], index: 4, kind: output, shape index: {0}]   ;;  %s1904_s5 = inlined_call_operand.hbm [shape: f32[2,8,8], index: 5, kind: output, shape index: {1}]  }
   0x1   :  { %1909 = sst [smem:[#allocation20_spill]] %s1901_s2 }
   0x2   :  { %1910 = sst [smem:[#allocation21_spill]] %s1902_s3 }
   0x3   :  { %11 = vsyncpa [#allocation4], 0 }
   0x4   :  { %13 = vsyncpa [#allocation4 + $0x1], 0 }
   0x5   :  { %14 = vsyncpa [#allocation7], 0 }
   0x6   :  { %16 = vsyncpa [#allocation7 + $0x1], 0 }
   0x7   :  { %17 = vsyncpa [#allocation10], 0 }
   0x8   :  { %18 = vsyncpa [#allocation5], 0 }
   0x9   :  { %20 = vsyncpa [#allocation5 + $0x1], 0 }
   0xa   :  { %21 = vsyncpa [#allocation13], 0 }
   0xb   :  { %23 = vsyncpa [#allocation13 + $0x1], 0  ;;  %s1568_s18 = smov 0   ;;  %s1570_s19 = smov 0  }
   0xc   :  { %s1572_s20 = smov 0   ;;  %s1574_s21 = smov 0  }
   0xd LB: > { %s1589_s22 = sadd.s32 4294967295, %s1512_s21   ;;  %s1069_s23 = sadd.s32 4294967294, %s1512_s21   ;;  %s1512_s21 = sphi %s1574_s21, %s1932_s21   ;;  %s1508_s20 = sphi %s1572_s20, %s1931_s20   ;;  %s1504_s19 = sphi %s1570_s19, %s1930_s19   ;;  %s1500_s18 = sphi %s1568_s18, %s1929_s18  }
   0xe   : > { %p49_p0 = scmp.ne.s32.totalorder %s1504_s19, %s1500_s18  ;;  %p1905_p1 = scmp.eq.s32.totalorder %s1589_s22, 0 }
   0xf   : > { %p147_p3 = scmp.eq.s32.totalorder %s1069_s23, 1  ;;  %p1070_p5 = scmp.ge.s32.totalorder %s1512_s21, 1 }
  0x10   : > { %p1598_p4 = por %p1905_p1, %p49_p0  ;;  %p180_p7 = scmp.lt.s32.totalorder %s1512_s21, 3 }
  0x11   : > { %p1603_p6 = por %p147_p3, %p49_p0  ;;  %s1514_s27 = smov [#allocation8]  }
  0x12   : > { %s1911_s24 = scalar_select %p1598_p4, 1, 0 }
  0x13   : > { %s1912_s25 = scalar_select %p1603_p6, 1, 0 }
  0x14   : > { %p1608_p8 = pnand %p1070_p5, %p180_p7  ;;  %s192_s28 = sshll.u32 %s1514_s27, 4  ;;  %s193_s28 = int_to_ptr.vmem [resolvable:$true] %s192_s28 }
  0x15   : > { %s1515_s30 = smov [#allocation9]   ;;  %s1309_s7 = scalar_lea.vmem %s193_s28, 512 }
  0x16   : > { %s1913_s26 = scalar_select %p1608_p8, 1, 0 }
  0x17   : > { %p1203_p9 = pneg %p1608_p8  ;;  %s205_s6 = sshll.u32 %s1515_s30, 4  ;;  %s206_s6 = int_to_ptr.vmem [resolvable:$true] %s205_s6 }
  0x18   : > { %p1310_p13 = scmp.ne.s32.totalorder %s193_s28, %s1309_s7  ;;  %p1317_p5 = scmp.lt.s32.totalorder %s193_s28, %s193_s28 }
  0x19   : > { %p1617_p11 = pnand %p1203_p9, %p1905_p1  ;;  %p1318_p7 = scmp.lt.s32.totalorder %s1309_s7, %s1309_s7 }
  0x1b   : > { %p1300_p12 = pneg %p1617_p11  ;;  %p1319_p10 = por %p1318_p7, %p1317_p5 }
  0x1d   : > { %p1312_p0 = pnand %p1310_p13, %p1300_p12 }
  0x1f   : > { %p1313_p3 = pneg %p1312_p0 }
  0x21   : > { %p1320_p9 = pnand %p1319_p10, %p1313_p3 }
  0x23   : > { %1323 = shalt.err (!%p1320_p9)
}
  0x24   : > { %s1516_s8 = smov 128   ;;  %s1517_s9 = smov 8  }
  0x25   : > { %s1915_s2 = sld [smem:[#allocation20_spill]]  ;;  %s1335_s12 = scalar_lea.vmem %s206_s6, 512 }
  0x26   : > { %p1336_p1 = scmp.ne.s32.totalorder %s206_s6, %s1335_s12  ;;  %p1343_p2 = scmp.lt.s32.totalorder %s206_s6, %s206_s6 }
  0x27   : > { %p1344_p6 = scmp.lt.s32.totalorder %s1335_s12, %s1335_s12 }
  0x28   : > { %p1338_p13 = pnand %p1336_p1, %p1300_p12 }
  0x29   : > { %p1345_p5 = por %p1344_p6, %p1343_p2 }
  0x2a   : > { %p1339_p0 = pneg %p1338_p13 }
  0x2b   : > { %1206 = dma.hbm_to_vmem [thread:$0]  (!%p1617_p11), %s1915_s2, 512, %s193_s28, [#allocation7], %s1516_s8, %s1516_s8, %s1517_s9  }
  0x2c   : > { %p1346_p10 = pnand %p1345_p5, %p1339_p0 }
  0x2e   : > { %1349 = shalt.err (!%p1346_p10)
}
  0x2f   : > { %s1916_s3 = sld [smem:[#allocation21_spill]]  ;;  %s1640_s15 = sadd.s32 1, %s1512_s21  }
  0x30   : > { %s36_s16 = sadd.s32 1, %s1508_s20  ;;  %s33_s17 = ssub.s32 %s1512_s21, %s1640_s15 }
  0x31   : > { %p43_p1 = scmp.ne.s32.totalorder %s1508_s20, %s1504_s19  ;;  %p34_p2 = scmp.eq.s32.totalorder %s33_s17, 0 }
  0x32   : > { %p44_p6 = scmp.eq.s32.totalorder %s1512_s21, 0  ;;  %p1917_p12 = scmp.eq.s32.totalorder %s1589_s22, 1 }
  0x33   : > { %p1226_p7 = scmp.lt.s32.totalorder %s1512_s21, 2  ;;  %s219_s28 = sand.u32 1, %s1508_s20  }
  0x34   : > { %p1650_p3 = por %p1917_p12, %p43_p1  ;;  %p45_p9 = por %p44_p6, %p43_p1 }
  0x35   : > { %1209 = dma.hbm_to_vmem [thread:$0]  (!%p1617_p11), %s1916_s3, 512, %s206_s6, [#allocation10], %s1516_s8, %s1516_s8, %s1517_s9  }
  0x36   : > { %s1918_s23 = scalar_select %p1650_p3, 1, 0 }
  0x37   : > { %s1656_s27 = scalar_select %p34_p2, %s1508_s20, %s36_s16  }
  0x38   : > { %s1659_s29 = sshll.u32 %s219_s28, 3  ;;  %s1075_s30 = sshll.u32 %s1512_s21, 7 }
  0x39   : > { %s1665_s8 = scalar_lea.hbm %s1899_s0, %s1075_s30  ;;  %s223_s9 = scalar_lea.vmem [#allocation3], %s1659_s29 }
  0x3a   : > { %s230_s10 = sshll.u32 %s223_s9, 4  ;;  %p1670_p11 = pnand %p1226_p7, %p45_p9  ;;  %s1668_s10 = int_to_ptr.vmem [resolvable:$true] %s230_s10 }
  0x3b   : > { %s1677_s14 = scalar_lea.hbm %s1900_s1, %s1075_s30  ;;  %s237_s16 = sand.u32 1, %s1512_s21  }
  0x3c   : > { %s220_s17 = scalar_lea.sflag [#allocation4], %s219_s28  ;;  %s1350_s6 = scalar_lea.hbm %s1665_s8, 128 }
  0x3d   : > { %p1351_p13 = scmp.ne.s32.totalorder %s1665_s8, %s1350_s6  ;;  %p1352_p0 = pneg %p1670_p11 }
  0x3e   : > { %s1355_s2 = scalar_lea.hbm %s1899_s0, 256  ;;  %p1356_p1 = scmp.lt.s32.totalorder %s1665_s8, %s1899_s0 }
  0x3f   : > { %p1353_p5 = pnand %p1352_p0, %p1351_p13  ;;  %p1357_p2 = scmp.lt.s32.totalorder %s1355_s2, %s1350_s6 }
  0x41   : > { %p1354_p10 = pneg %p1353_p5  ;;  %p1358_p6 = por %p1357_p2, %p1356_p1 }
  0x43   : > { %p1359_p12 = pnand %p1358_p6, %p1354_p10 }
  0x45   : > { %1362 = shalt.err (!%p1359_p12)
}
  0x46   : > { %s1363_s28 = scalar_lea.vmem %s1668_s10, 128  ;;  %s1518_s30 = smov [#allocation3]  }
  0x47   : > { %p1364_p7 = scmp.ne.s32.totalorder %s1668_s10, %s1363_s28  ;;  %s1368_s13 = sshll.u32 %s1518_s30, 4  ;;  %s1369_s13 = int_to_ptr.vmem [resolvable:$false] %s1368_s13 }
  0x48   : > { %s1370_s7 = scalar_lea.vmem %s1369_s13, 256  ;;  %p1371_p5 = scmp.lt.s32.totalorder %s1668_s10, %s1369_s13 }
  0x49   : > { %p1366_p9 = pnand %p1364_p7, %p1352_p0  ;;  %p1372_p3 = scmp.lt.s32.totalorder %s1370_s7, %s1363_s28 }
  0x4b   : > { %p1367_p13 = pneg %p1366_p9  ;;  %p1373_p4 = por %p1372_p3, %p1371_p5 }
  0x4d   : > { %p1374_p1 = pnand %p1373_p4, %p1367_p13 }
  0x4f   : > { %1377 = shalt.err (!%p1374_p1)
}
  0x50   : > { %1213 = dma.hbm_to_vmem [thread:$0]  (!%p1670_p11), %s1665_s8, 128, %s1668_s10, %s220_s17  }
  0x51   : > { %s241_s2 = scalar_lea.vmem [#allocation6], %s1659_s29  ;;  %s238_s6 = scalar_lea.sflag [#allocation7], %s237_s16 }
  0x52   : > { %s248_s3 = sshll.u32 %s241_s2, 4  ;;  %s1378_s9 = scalar_lea.hbm %s1677_s14, 128  ;;  %s249_s3 = int_to_ptr.vmem [resolvable:$true] %s248_s3 }
  0x53   : > { %p1379_p3 = scmp.ne.s32.totalorder %s1677_s14, %s1378_s9  ;;  %s1383_s30 = scalar_lea.hbm %s1900_s1, 256 }
  0x54   : > { %p1384_p2 = scmp.lt.s32.totalorder %s1677_s14, %s1900_s1  ;;  %p1385_p6 = scmp.lt.s32.totalorder %s1383_s30, %s1378_s9 }
  0x55   : > { %p1381_p4 = pnand %p1379_p3, %p1352_p0 }
  0x56   : > { %p1386_p12 = por %p1385_p6, %p1384_p2 }
  0x57   : > { %p1382_p10 = pneg %p1381_p4 }
  0x59   : > { %p1387_p7 = pnand %p1386_p12, %p1382_p10 }
  0x5b   : > { %1390 = shalt.err (!%p1387_p7)
}
  0x5c   : > { %s1391_s29 = scalar_lea.vmem %s249_s3, 128  ;;  %s1519_s8 = smov [#allocation6]  }
  0x5d   : > { %p1392_p9 = scmp.ne.s32.totalorder %s249_s3, %s1391_s29  ;;  %s1396_s10 = sshll.u32 %s1519_s8, 4  ;;  %s1397_s10 = int_to_ptr.vmem [resolvable:$false] %s1396_s10 }
  0x5e   : > { %s1398_s16 = scalar_lea.vmem %s1397_s10, 256  ;;  %p1399_p1 = scmp.lt.s32.totalorder %s249_s3, %s1397_s10 }
  0x5f   : > { %p1394_p13 = pnand %p1392_p9, %p1352_p0  ;;  %p1400_p3 = scmp.lt.s32.totalorder %s1398_s16, %s1391_s29 }
  0x61   : > { %p1395_p5 = pneg %p1394_p13  ;;  %p1401_p4 = por %p1400_p3, %p1399_p1 }
  0x63   : > { %p1402_p8 = pnand %p1401_p4, %p1395_p5 }
  0x65   : > { %1405 = shalt.err (!%p1402_p8)
}
  0x66   : > { %1216 = dma.hbm_to_vmem [thread:$0]  (!%p1670_p11), %s1677_s14, 128, %s249_s3, %s238_s6  }
  0x67   : > { %p1920_p10 = scmp.ne.s32.totalorder %s1913_s26, 0 }
  0x68   : > { %s1728_s17 = sand.u32 (!%p1920_p10), 1, %s1504_s19   ;;  %p1921_p0 = scmp.ne.s32.totalorder (!%p1920_p10), %s1911_s24, 0 }
  0x69   : > { %257 = sbr.rel (%p1920_p10) target bundleno = 1545 (0x609), region = 36  ;;  %s1731_s2 = sshll.u32 (!%p1920_p10), %s1728_s17, 3 }
  0x6a   : > { %s260_s9 = scalar_lea.sflag (!%p1920_p10), [#allocation4], %s1728_s17  ;;  %s263_s12 = scalar_lea.vmem (!%p1920_p10), [#allocation3], %s1731_s2 }
  0x6e   : > { %1475 = dma.done.wait (%p1921_p0), %s260_s9, 128  }
  0x6f   : > { %1477 = vsyncadd (%p1921_p0), %s260_s9, 4294967168  ;;  %s268_s26 = sand.u32 1, %s1589_s22   ;;  %s272_s14 = scalar_lea.vmem [#allocation6], %s1731_s2 }
  0x70   : > { %s269_s11 = scalar_lea.sflag [#allocation7], %s268_s26 }
  0x71   : > { %1479 = dma.done.wait (%p1921_p0), %s269_s11, 128  }
  0x72   : > { %1481 = vsyncadd (%p1921_p0), %s269_s11, 4294967168  ;;  %p1922_p8 = scmp.eq.s32.totalorder %s1589_s22, 0 }
  0x74   : > { %1483 = dma.done.wait (%p1922_p8), [#allocation7], 512   ;;  %p1923_p11 = pmov %p1922_p8 }
  0x75   : > { %p1924_p2 = pmov %p1922_p8 }
  0x76   : > { %1485 = vsyncadd (%p1923_p11), [#allocation7], 4294966784 }
  0x77   : > { %1487 = dma.done.wait (%p1924_p2), [#allocation10], 512   ;;  %p1925_p6 = pmov %p1924_p2 }
  0x78   : > { %v1520_v0 = vmov 0.0   ;;  %vm1521_vm0 = vmmov 0   ;;  %v322_v1 = vld [vmem:[#allocation8 + $0x10] sm:$0xff]  ;;  %v323_v2 = vld [vmem:[#allocation8 + $0x18] sm:$0xff]  ;;  %v320_v3 = vld [vmem:[#allocation8] sm:$0xff]  ;;  %vm326_vm1 = vcmask 261120  }
  0x79   : > { %1489 = vsyncadd (%p1925_p6), [#allocation10], 4294966784  ;;  %1123 = vmatprep.subr.bf16.mxu0 %v1520_v0  ;;  %1127 = vmatprep.mubr.msk.bf16.mxu0 %vm1521_vm0, %v1520_v0  ;;  %v325_v4 = vpack.c.bf16 %v323_v2, %v322_v1  ;;  %v321_v5 = vld [vmem:[#allocation8 + $0x8] sm:$0xff]  ;;  %s1522_s24 = smov 96   ;;  %s1523_s3 = smov 120   ;;  %vm377_vm2 = vcmask 64512  }
  0x7a   : > { %1131 = vmatprep.subr.bf16.mxu1 %v1520_v0  ;;  %1133 = vmatprep.mubr.msk.bf16.mxu1 %vm1521_vm0, %v1520_v0  ;;  %v324_v6 = vpack.c.bf16 %v321_v5, %v320_v3  ;;  %v318_v7 = vld [vmem:[%s263_s12] sm:$0xff]  ;;  %s1524_s6 = smov 88   ;;  %s1525_s28 = smov 80   ;;  %v370_v27 = vld [vmem:[%s272_s14] sm:$0xff]  ;;  %vm442_vm3 = vcmask 1043456   ;;  %vm603_vm4 = vcmask 130112  }
  0x7b   : > { %1124 = vmatpush3.bf16.msra.mxu0 %v325_v4  ;;  %v319_v8 = vpack.c.bf16 %v318_v7, %v318_v7  ;;  %s1526_s30 = smov 112   ;;  %s1527_s13 = smov 72   ;;  %vm720_vm5 = vcmask 195712   ;;  %vm837_vm6 = vcmask 261312  }
  0x7c   : > { %1125 = vmatprep.subr.bf16.mxu0 %v1520_v0  ;;  %s1528_s7 = smov 104   ;;  %s1529_s29 = smov 56  }
  0x7d   : > { %s1530_s8 = smov 64   ;;  %s1531_s10 = smov 40  }
  0x7e   : > { %s1532_s16 = smov 48   ;;  %s316_s9 = scalar_lea.vmem [#allocation12], %s1731_s2 }
  0x7f   : > { %1126 = vmatpush3.bf16.msra.mxu0 %v324_v6  ;;  %s1533_s12 = smov 8   ;;  %s1534_s26 = smov 16  }
  0x80   : > { %1137 = vmatprep.subr.bf16.mxu0 %v1520_v0  ;;  %s1535_s11 = smov 24   ;;  %s1097_s14 = sshll.u32 %s1589_s22, 7 }
  0x81   : > { %p1926_p7 = scmp.ne.s32.totalorder %s1918_s23, 0 }
  0x82   : > { %1128 = vmatmul.mubr.msk.bf16.vlgmr.msra.gmra.mxu0 %vm326_vm1, %v319_v8 }
  0x83   : > { %1139 = vmatprep.mubr.msk.bf16.mxu0 %vm1521_vm0, %v1520_v0 }
 0x142   : > { %v364_v9 = vpop.f32.mrf.mxu0 }
 0x143   : > { %v371_v10 = vmul.f32 0.35355338, %v364_v9  ;;  %v1764_v11 = vpack.c.bf16 %v364_v9, %v364_v9 }
 0x144   : > { %v1129_v12 = vpop.f32.mrf.mxu0 }
 0x145   : > { %v372_v13 = vpack.c.bf16 %v371_v10, %v371_v10  ;;  %375 = vrot.lane.b32.xlu0 %v1764_v11, %s1522_s24 }
 0x146   : > { %v367_v14 = vpop.f32.mrf.mxu0 }
 0x147   : > { %488 = vrot.lane.b32.xlu1 %v372_v13, %s1523_s3 }
 0x148   : > { %v1130_v15 = vpop.f32.mrf.mxu0 }
 0x149   : > { %490 = vrot.lane.b32.xlu0 %v1764_v11, %s1524_s6  ;;  %s923_s6 = scalar_lea.hbm %s1904_s5, %s1097_s14 }
 0x14b   : > { %607 = vrot.lane.b32.xlu1 %v1764_v11, %s1525_s28  ;;  %s925_s28 = sshll.u32 %s316_s9, 4  ;;  %s926_s28 = int_to_ptr.vmem [resolvable:$true] %s925_s28 }
 0x14d   : > { %605 = vrot.lane.b32.xlu0 %v372_v13, %s1526_s30  ;;  %s899_s30 = scalar_lea.sflag [#allocation13], %s1728_s17 }
 0x14f   : > { %724 = vrot.lane.b32.xlu1 %v1764_v11, %s1527_s13  ;;  %s1406_s13 = scalar_lea.vmem %s926_s28, 128 }
 0x150   : > { %p1407_p12 = scmp.ne.s32.totalorder %s926_s28, %s1406_s13 }
 0x151   : > { %722 = vrot.lane.b32.xlu0 %v372_v13, %s1528_s7  ;;  %s1536_s7 = smov [#allocation12]  }
 0x152   : > { %p1408_p9 = pnand %p1407_p12, %p1926_p7 }
 0x154   : > { %p1409_p13 = pneg %p1408_p9 }
 0x1b7   : > { %v376_v16 = vpop.permute.xlu0 %375 }
 0x1b8   : > { %v382_v17 = vsel %vm377_vm2, %v376_v16, 0 }
 0x1b9   : > { %1132 = vmatpush3.bf16.xpose.msra.mxu1 %v382_v17  ;;  %v489_v19 = vpop.permute.xlu1 %488 }
 0x1ba   : > { %1143 = vmatprep.subr.bf16.mxu1 %v1520_v0 }
 0x1bb   : > { %v491_v18 = vpop.permute.xlu0 %490 }
 0x1bc   : > { %v496_v20 = vsel %vm377_vm2, %v491_v18, 0 }
 0x1bd   : > { %v608_v21 = vpop.permute.xlu1 %607 }
 0x1be   : > { %v613_v22 = vsel %vm377_vm2, %v608_v21, 0 }
 0x1bf   : > { %v606_v24 = vpop.permute.xlu0 %605 }
 0x1c0   : > { %1134 = vmatmul.mubr.msk.bf16.vlgmr.msra.gmra.mxu1 %vm377_vm2, %v372_v13 }
 0x1c1   : > { %1144 = vmatpush3.bf16.xpose.msra.mxu1 %v496_v20  ;;  %1145 = vmatprep.mubr.msk.bf16.mxu1 %vm1521_vm0, %v1520_v0  ;;  %v725_v23 = vpop.permute.xlu1 %724 }
 0x1c2   : > { %1155 = vmatprep.subr.bf16.mxu1 %v1520_v0  ;;  %v730_v25 = vsel %vm377_vm2, %v725_v23, 0 }
 0x1c3   : > { %v723_v26 = vpop.permute.xlu0 %722 }
 0x1c8   : > { %1146 = vmatmul.mubr.msk.bf16.vlgmr.msra.gmra.mxu1 %vm377_vm2, %v489_v19 }
 0x1c9   : > { %1156 = vmatpush3.bf16.xpose.msra.mxu1 %v613_v22  ;;  %1157 = vmatprep.mubr.msk.bf16.mxu1 %vm1521_vm0, %v1520_v0 }
 0x1ca   : > { %1167 = vmatprep.subr.bf16.mxu1 %v1520_v0 }
 0x1d0   : > { %1158 = vmatmul.mubr.msk.bf16.vlgmr.msra.gmra.mxu1 %vm377_vm2, %v606_v24 }
 0x1d1   : > { %1168 = vmatpush3.bf16.xpose.msra.mxu1 %v730_v25  ;;  %1169 = vmatprep.mubr.msk.bf16.mxu1 %vm1521_vm0, %v1520_v0 }
 0x1d2   : > { %1179 = vmatprep.subr.bf16.mxu1 %v1520_v0 }
 0x1d8   : > { %1170 = vmatmul.mubr.msk.bf16.vlgmr.msra.gmra.mxu1 %vm377_vm2, %v723_v26 }
 0x1d9   : > { %1183 = vmatprep.mubr.msk.bf16.mxu1 %vm1521_vm0, %v1520_v0 }
 0x280   : > { %v418_v28 = vpop.f32.mrf.mxu1 }
 0x281   : > { %v419_v29 = vadd.f32 %v418_v28, %v370_v27 }
 0x282   : > { %v1135_v30 = vpop.f32.mrf.mxu1 }
 0x283   : > { %v424_v31 = vsel %vm377_vm2, %v419_v29, -inf }
 0x284   : > { %425 = vmax.xlane.f32.xlu1 %v424_v31  ;;  %v421_v32 = vpop.f32.mrf.mxu1 }
 0x286   : > { %v1136_v33 = vpop.f32.mrf.mxu1 }
 0x288   : > { %v532_v34 = vpop.f32.mrf.mxu1 }
 0x289   : > { %v533_v35 = vadd.f32 %v532_v34, %v370_v27 }
 0x28a   : > { %v1147_v36 = vpop.f32.mrf.mxu1 }
 0x28b   : > { %v538_v37 = vsel %vm377_vm2, %v533_v35, -inf }
 0x28c   : > { %539 = vmax.xlane.f32.xlu0 %v538_v37  ;;  %v535_v38 = vpop.f32.mrf.mxu1 }
 0x28e   : > { %v1148_v39 = vpop.f32.mrf.mxu1 }
 0x290   : > { %v649_v40 = vpop.f32.mrf.mxu1 }
 0x291   : > { %v650_v41 = vadd.f32 %v649_v40, %v370_v27 }
 0x292   : > { %v1159_v42 = vpop.f32.mrf.mxu1 }
 0x293   : > { %v655_v43 = vsel %vm377_vm2, %v650_v41, -inf }
 0x294   : > { %656 = vmax.xlane.f32.xlu0 %v655_v43  ;;  %v652_v44 = vpop.f32.mrf.mxu1 }
 0x296   : > { %v1160_v45 = vpop.f32.mrf.mxu1 }
 0x297   : > { %v843_v45 = vld [vmem:[#allocation9 + $0x10] sm:$0xff] }
 0x298   : > { %v766_v46 = vpop.f32.mrf.mxu1 }
 0x299   : > { %v767_v47 = vadd.f32 %v766_v46, %v370_v27  ;;  %v844_v46 = vld [vmem:[#allocation9 + $0x18] sm:$0xff] }
 0x29a   : > { %v1171_v48 = vpop.f32.mrf.mxu1 }
 0x29b   : > { %v772_v49 = vsel %vm377_vm2, %v767_v47, -inf  ;;  %v846_v48 = vpack.c.bf16 %v844_v46, %v843_v45 }
 0x29c   : > { %773 = vmax.xlane.f32.xlu1 %v772_v49  ;;  %v769_v50 = vpop.f32.mrf.mxu1  ;;  %v842_v49 = vld [vmem:[#allocation9 + $0x8] sm:$0xff] }
 0x29d   : > { %1180 = vmatpush3.bf16.msra.mxu1 %v846_v48 }
 0x29e   : > { %v1172_v51 = vpop.f32.mrf.mxu1  ;;  %1181 = vmatprep.subr.bf16.mxu1 %v1520_v0 }
 0x30d   : > { %v426_v52 = vpop.xlane.xlu1 %425 }
 0x30e   : > { %v427_v53 = vsub.f32 %v419_v29, %v426_v52 }
 0x310   : > { %v428_v54 = vmul.f32 1.442695, %v427_v53 }
 0x312   : > { %1282 = vpow2.f32 %v428_v54 }
 0x315   : > { %v540_v55 = vpop.xlane.xlu0 %539 }
 0x316   : > { %v541_v56 = vsub.f32 %v533_v35, %v540_v55 }
 0x318   : > { %v542_v57 = vmul.f32 1.442695, %v541_v56 }
 0x31a   : > { %1284 = vpow2.f32 %v542_v57 }
 0x31d   : > { %v657_v58 = vpop.xlane.xlu0 %656 }
 0x31e   : > { %v658_v59 = vsub.f32 %v650_v41, %v657_v58 }
 0x31f   : > { %v1283_v60 = vpop.eup %1282 }
 0x320   : > { %v659_v61 = vmul.f32 1.442695, %v658_v59  ;;  %v430_v62 = vsel %vm377_vm2, %v1283_v60, 0.0 }
 0x321   : > { %431 = vadd.xlane.f32.xlu0 %v430_v62 }
 0x322   : > { %1286 = vpow2.f32 %v659_v61 }
 0x325   : > { %v774_v4 = vpop.xlane.xlu1 %773 }
 0x326   : > { %v775_v5 = vsub.f32 %v767_v47, %v774_v4  ;;  %v841_v47 = vld [vmem:[#allocation9] sm:$0xff] }
 0x327   : > { %v1285_v63 = vpop.eup %1284  ;;  %v845_v51 = vpack.c.bf16 %v842_v49, %v841_v47 }
 0x328   : > { %v544_v1 = vsel %vm377_vm2, %v1285_v63, 0.0  ;;  %v776_v6 = vmul.f32 1.442695, %v775_v5 }
 0x329   : > { %545 = vadd.xlane.f32.xlu1 %v544_v1  ;;  %1182 = vmatpush3.bf16.msra.mxu1 %v845_v51 }
 0x32a   : > { %1288 = vpow2.f32 %v776_v6 }
 0x32f   : > { %v1287_v2 = vpop.eup %1286 }
 0x330   : > { %v661_v3 = vsel %vm377_vm2, %v1287_v2, 0.0 }
 0x331   : > { %662 = vadd.xlane.f32.xlu0 %v661_v3 }
 0x337   : > { %v1289_v7 = vpop.eup %1288 }
 0x338   : > { %v778_v8 = vsel %vm377_vm2, %v1289_v7, 0.0 }
 0x33a   : > { %551 = vrot.lane.b32.xlu1 %v1764_v11, %s1529_s29  ;;  %s1410_s29 = sshll.u32 %s1536_s7, 4  ;;  %s1411_s29 = int_to_ptr.vmem [resolvable:$false] %s1410_s29 }
 0x33b   : > { %p1413_p5 = scmp.lt.s32.totalorder %s926_s28, %s1411_s29 }
 0x347   : > { %437 = vrot.lane.b32.xlu0 %v1764_v11, %s1530_s8  ;;  %s1412_s8 = scalar_lea.vmem %s1411_s29, 256 }
 0x348   : > { %p1414_p1 = scmp.lt.s32.totalorder %s1412_s8, %s1406_s13 }
 0x34a   : > { %p1415_p3 = por %p1414_p1, %p1413_p5 }
 0x34b   : > { %785 = vrot.lane.b32.xlu0 %v1764_v11, %s1531_s10 }
 0x34c   : > { %p1416_p4 = pnand %p1415_p3, %p1409_p13 }
 0x35e   : > { %779 = vadd.xlane.f32.xlu1 %v778_v8 }
 0x36f   : > { %668 = vrot.lane.b32.xlu1 %v1764_v11, %s1532_s16 }
 0x3aa   : > { %v432_v9 = vpop.xlane.xlu0 %431 }
 0x3ab   : > { %1290 = vrcp.f32 %v432_v9 }
 0x3b2   : > { %v546_v10 = vpop.xlane.xlu1 %545 }
 0x3b3   : > { %1292 = vrcp.f32 %v546_v10 }
 0x3b6   : > { %v552_v17 = vpop.permute.xlu1 %551 }
 0x3b7   : > { %v557_v20 = vsel %vm442_vm3, %v552_v17, 0 }
 0x3b8   : > { %v1291_v12 = vpop.eup %1290 }
 0x3b9   : > { %v434_v14 = vmul.f32 %v1291_v12, %v1283_v60 }
 0x3ba   : > { %v663_v13 = vpop.xlane.xlu0 %662 }
 0x3bb   : > { %v436_v18 = vpack.c.bf16 %v434_v14, %v434_v14  ;;  %1294 = vrcp.f32 %v663_v13 }
 0x3be   : > { %v438_v15 = vpop.permute.xlu0 %437 }
 0x3bf   : > { %v444_v16 = vsel %vm442_vm3, %v438_v15, 0 }
 0x3c0   : > { %1138 = vmatpush3.bf16.msra.mxu0 %v444_v16  ;;  %v1293_v19 = vpop.eup %1292 }
 0x3c1   : > { %1149 = vmatprep.subr.bf16.mxu0 %v1520_v0  ;;  %v548_v11 = vmul.f32 %v1293_v19, %v1285_v63 }
 0x3c2   : > { %v786_v27 = vpop.permute.xlu0 %785 }
 0x3c3   : > { %1140 = vmatmul.mubr.msk.bf16.vlgmr.msra.gmra.mxu0 %vm377_vm2, %v436_v18  ;;  %v550_v21 = vpack.c.bf16 %v548_v11, %v548_v11  ;;  %v791_v29 = vsel %vm442_vm3, %v786_v27, 0  ;;  %v549_v30 = vadd.f32 %v548_v11, %v434_v14 }
 0x3c4   : > { %1150 = vmatpush3.bf16.msra.mxu0 %v557_v20  ;;  %1151 = vmatprep.mubr.msk.bf16.mxu0 %vm1521_vm0, %v1520_v0 }
 0x3c5   : > { %1161 = vmatprep.subr.bf16.mxu0 %v1520_v0 }
 0x3c8   : > { %v1295_v22 = vpop.eup %1294 }
 0x3c9   : > { %v665_v24 = vmul.f32 %v1295_v22, %v1287_v2 }
 0x3cb   : > { %1152 = vmatmul.mubr.msk.bf16.vlgmr.msra.gmra.mxu0 %vm377_vm2, %v550_v21  ;;  %v667_v28 = vpack.c.bf16 %v665_v24, %v665_v24  ;;  %v666_v32 = vadd.f32 %v665_v24, %v549_v30 }
 0x3cc   : > { %1163 = vmatprep.mubr.msk.bf16.mxu0 %vm1521_vm0, %v1520_v0 }
 0x3e7   : > { %v780_v23 = vpop.xlane.xlu1 %779 }
 0x3e8   : > { %1296 = vrcp.f32 %v780_v23 }
 0x3eb   : > { %v669_v25 = vpop.permute.xlu1 %668 }
 0x3ec   : > { %v674_v26 = vsel %vm442_vm3, %v669_v25, 0 }
 0x3ed   : > { %1162 = vmatpush3.bf16.msra.mxu0 %v674_v26 }
 0x3ee   : > { %1173 = vmatprep.subr.bf16.mxu0 %v1520_v0 }
 0x3f0   : > { %1164 = vmatmul.mubr.msk.bf16.vlgmr.msra.gmra.mxu0 %vm377_vm2, %v667_v28 }
 0x3f1   : > { %1174 = vmatpush3.bf16.msra.mxu0 %v791_v29  ;;  %1175 = vmatprep.mubr.msk.bf16.mxu0 %vm1521_vm0, %v1520_v0 }
 0x3f5   : > { %v1297_v31 = vpop.eup %1296 }
 0x3f6   : > { %v782_v33 = vmul.f32 %v1297_v31, %v1289_v7 }
 0x3f8   : > { %v784_v34 = vpack.c.bf16 %v782_v33, %v782_v33  ;;  %v783_v35 = vadd.f32 %v782_v33, %v666_v32 }
 0x3fa   : > { %1176 = vmatmul.mubr.msk.bf16.vlgmr.msra.gmra.mxu0 %vm377_vm2, %v784_v34  ;;  %v891_v36 = vmul.f32 0.25, %v783_v35 }
 0x3fc   : > { %892 = vst.msk [vmem:[%s316_s9] sm:$0xff] %vm377_vm2, %v891_v36 }
 0x483   : > { %v480_v37 = vpop.f32.mrf.mxu0 }
 0x484   : > { %486 = vst.msk [vmem:[#allocation2] sm:$0xff] %vm377_vm2, %v480_v37 }
 0x485   : > { %v1141_v38 = vpop.f32.mrf.mxu0 }
 0x487   : > { %v483_v39 = vpop.f32.mrf.mxu0 }
 0x489   : > { %v1142_v40 = vpop.f32.mrf.mxu0 }
 0x48b   : > { %v593_v41 = vpop.f32.mrf.mxu0 }
 0x48c   : > { %600 = vrot.lane.b32.xlu1 %v593_v41, %s1533_s12 }
 0x48d   : > { %v1153_v42 = vpop.f32.mrf.mxu0 }
 0x48f   : > { %v596_v43 = vpop.f32.mrf.mxu0 }
 0x491   : > { %v1154_v44 = vpop.f32.mrf.mxu0 }
 0x4b0   : > { %v710_v50 = vpop.f32.mrf.mxu0 }
 0x4b1   : > { %717 = vrot.lane.b32.xlu0 %v710_v50, %s1534_s26 }
 0x4b2   : > { %v1165_v52 = vpop.f32.mrf.mxu0 }
 0x4b4   : > { %v713_v53 = vpop.f32.mrf.mxu0 }
 0x4b6   : > { %v1166_v54 = vpop.f32.mrf.mxu0 }
 0x4ba   : > { %v827_v55 = vpop.f32.mrf.mxu0 }
 0x4bb   : > { %834 = vrot.lane.b32.xlu1 %v827_v55, %s1535_s11 }
 0x4bc   : > { %v1177_v56 = vpop.f32.mrf.mxu0 }
 0x4be   : > { %v830_v57 = vpop.f32.mrf.mxu0 }
 0x4c0   : > { %v1178_v58 = vpop.f32.mrf.mxu0 }
 0x4fe   : > { %v601_v59 = vpop.permute.xlu1 %600 }
 0x4ff   : > { %604 = vst.msk [vmem:[#allocation2] sm:$0xff] %vm603_vm4, %v601_v59 }
 0x523   : > { %v718_v60 = vpop.permute.xlu0 %717 }
 0x524   : > { %721 = vst.msk [vmem:[#allocation2] sm:$0xff] %vm720_vm5, %v718_v60 }
 0x52d   : > { %v835_v0 = vpop.permute.xlu1 %834 }
 0x52e   : > { %838 = vst.msk [vmem:[#allocation2] sm:$0xff] %vm837_vm6, %v835_v0 }
 0x535   : > { %v839_v61 = vld [vmem:[#allocation2] sm:$0xff] }
 0x536   : > { %v840_v62 = vpack.c.bf16 %v839_v61, %v839_v61 }
 0x538   : > { %1184 = vmatmul.mubr.msk.bf16.vlgmr.msra.gmra.mxu1 %vm326_vm1, %v840_v62 }
 0x539   : > { %1419 = shalt.err (!%p1416_p4)
}
 0x53a   : > { %s1420_s10 = scalar_lea.hbm %s923_s6, 128  ;;  %s1424_s12 = scalar_lea.hbm %s1904_s5, 256 }
 0x53b   : > { %p1421_p10 = scmp.ne.s32.totalorder %s923_s6, %s1420_s10  ;;  %p1425_p11 = scmp.lt.s32.totalorder %s923_s6, %s1904_s5 }
 0x53c   : > { %p1426_p2 = scmp.lt.s32.totalorder %s1424_s12, %s1420_s10 }
 0x53d   : > { %p1422_p0 = pnand %p1421_p10, %p1926_p7 }
 0x53e   : > { %p1427_p6 = por %p1426_p2, %p1425_p11 }
 0x53f   : > { %p1423_p8 = pneg %p1422_p0 }
 0x541   : > { %p1428_p12 = pnand %p1427_p6, %p1423_p8 }
 0x543   : > { %1431 = shalt.err (!%p1428_p12)
}
 0x544   : > { %1200 = dma.vmem_to_hbm [thread:$0]  (%p1926_p7), %s926_s28, 128, %s923_s6, %s899_s30  }
 0x545   : > { %s309_s24 = scalar_lea.vmem [#allocation11], %s1731_s2  ;;  %s1855_s29 = scalar_lea.hbm %s1903_s4, %s1097_s14 }
 0x546   : > { %s912_s3 = sshll.u32 %s309_s24, 4  ;;  %s894_s8 = scalar_lea.sflag [#allocation5], %s1728_s17  ;;  %s1857_s3 = int_to_ptr.vmem [resolvable:$true] %s912_s3 }
 0x547   : > { %s1432_s10 = scalar_lea.vmem %s1857_s3, 128  ;;  %s1537_s22 = smov [#allocation11]  }
 0x548   : > { %p1433_p9 = scmp.ne.s32.totalorder %s1857_s3, %s1432_s10  ;;  %s1436_s2 = sshll.u32 %s1537_s22, 4  ;;  %s1437_s2 = int_to_ptr.vmem [resolvable:$false] %s1436_s2 }
 0x549   : > { %s1438_s14 = scalar_lea.vmem %s1437_s2, 256  ;;  %p1439_p1 = scmp.lt.s32.totalorder %s1857_s3, %s1437_s2 }
 0x54a   : > { %p1434_p13 = pnand %p1433_p9, %p1926_p7  ;;  %p1440_p3 = scmp.lt.s32.totalorder %s1438_s14, %s1432_s10 }
 0x54c   : > { %p1435_p5 = pneg %p1434_p13  ;;  %p1441_p4 = por %p1440_p3, %p1439_p1 }
 0x54e   : > { %p1442_p10 = pnand %p1441_p4, %p1435_p5 }
 0x5f8   : > { %v884_v63 = vpop.f32.mrf.mxu1 }
 0x5f9   : > { %890 = vst.msk [vmem:[%s309_s24] sm:$0xff] %vm326_vm1, %v884_v63 }
 0x5fa   : > { %v1185_v1 = vpop.f32.mrf.mxu1 }
 0x5fb   : > { %1445 = shalt.err (!%p1442_p10)
}
 0x5fc   : > { %s1446_s6 = scalar_lea.hbm %s1855_s29, 128  ;;  %s1450_s30 = scalar_lea.hbm %s1903_s4, 256 }
 0x5fd   : > { %p1447_p0 = scmp.ne.s32.totalorder %s1855_s29, %s1446_s6  ;;  %p1451_p2 = scmp.lt.s32.totalorder %s1855_s29, %s1903_s4 }
 0x5fe   : > { %p1452_p6 = scmp.lt.s32.totalorder %s1450_s30, %s1446_s6 }
 0x5ff   : > { %p1448_p8 = pnand %p1447_p0, %p1926_p7 }
 0x600   : > { %p1453_p12 = por %p1452_p6, %p1451_p2 }
 0x601   : > { %p1449_p11 = pneg %p1448_p8 }
 0x603   : > { %p1454_p9 = pnand %p1453_p12, %p1449_p11 }
 0x605   : > { %1457 = shalt.err (!%p1454_p9)
}
 0x606   : > { %1199 = dma.vmem_to_hbm [thread:$0]  (%p1926_p7), %s1857_s3, 128, %s1855_s29, %s894_s8   ;;  %v887_v2 = vpop.f32.mrf.mxu1 }
 0x608   : > { %v1186_v3 = vpop.f32.mrf.mxu1 }
 0x609 PF: > { %s937_s12 = sand.u32 1, %s1500_s18   ;;  %p1927_p13 = scmp.ne.s32.totalorder %s1912_s25, 0 }
 0x60a   : > { %p1928_p5 = scmp.ge.s32.totalorder %s1512_s21, 2  ;;  %s938_s26 = scalar_lea.sflag [#allocation5], %s937_s12 }
 0x60c   : > { %p1218_p1 = pnand %p1928_p5, %p1927_p13 }
 0x60e   : > { %p1219_p3 = pneg %p1218_p1 }
 0x610   : > { %1491 = dma.done.wait (%p1219_p3), %s938_s26, 128  }
 0x611   : > { %1493 = vsyncadd (%p1219_p3), %s938_s26, 4294967168  ;;  %s947_s11 = scalar_lea.sflag [#allocation13], %s937_s12 }
 0x612   : > { %1495 = dma.done.wait (%p1219_p3), %s947_s11, 128  }
 0x613   : > { %1497 = vsyncadd (%p1219_p3), %s947_s11, 4294967168  ;;  %p26_p7 = scmp.ge.s32.totalorder %s1640_s15, 4   ;;  %s1929_s18 = smov %s1504_s19 }
 0x614   : > { %s1930_s19 = smov %s1508_s20  ;;  %s1931_s20 = smov %s1656_s27 }
 0x615   : > { %s1932_s21 = smov %s1640_s15  ;;  %28 = sbr.rel (!%p26_p7) target bundleno = 13 (0xd), region = 119 }
 0x61a   :  { %952 = vsyncpa [#allocation4], 1 }
 0x61b   :  { %954 = vsyncpa [#allocation4 + $0x1], 1 }
 0x61c   :  { %955 = vsyncpa [#allocation7], 1 }
 0x61d   :  { %957 = vsyncpa [#allocation7 + $0x1], 1 }
 0x61e   :  { %958 = vsyncpa [#allocation10], 1 }
 0x61f   :  { %959 = vsyncpa [#allocation5], 1 }
 0x620   :  { %961 = vsyncpa [#allocation5 + $0x1], 1 }
 0x621   :  { %962 = vsyncpa [#allocation13], 1 }
 0x622   :  { %964 = vsyncpa [#allocation13 + $0x1], 1 }

</bundles_post_ra>
